<compile_context>
chip_gen: v5e
topology: v5e:2x2
jax: 0.10.0
libtpu: 0.0.40
codegen_flags: <defaults>
</compile_context>

<pallas_src>
import functools

import jax
import jax.numpy as jnp
import numpy as np
from jax.experimental import pallas as pl
from jax.experimental.pallas import tpu as pltpu

K = 3
STRIDE = 2
PADDING = 1
OUTPUT_PADDING = 1
EPS = 1e-5                       # torch.nn.InstanceNorm2d default
COMPUTE_DTYPE = jnp.bfloat16     # matmul operand / kernel-output dtype (accumulate in f32)


def _pick_block_batch(B, max_bt=4):
    """Largest divisor of B that is <= max_bt while keeping >= 2 grid steps."""
    best = 1
    for bt in range(1, min(B, max_bt) + 1):
        if B % bt == 0 and B // bt >= 2:
            best = bt
    return best


def _deconv_block_kernel(x_ref, w_ref, o_ref, *, Cout, Bt):
    """Bt batch samples per grid step.

    x_ref: (Bt, 4*Cin, HW)   shift-stacked input, channels-first, bf16
    w_ref: (4*Cout, 4*Cin)   fused polyphase weights, bf16
    o_ref: (Bt, 4*Cout, HW)  parity-major output planes (p = 2*py + px)
    """
    HW = x_ref.shape[-1]
    inv_n = 1.0 / (4.0 * HW)
    w = w_ref[...]

    for bt in range(Bt):  # static unroll: amortizes fixed per-grid-step overhead
        # One fused matmul produces all 9 transposed-conv taps for all four
        # output parities at once; rows [p*Cout:(p+1)*Cout] are parity p.
        acc = jnp.dot(w, x_ref[bt], preferred_element_type=jnp.float32)  # (4*Cout, HW) f32

        # InstanceNorm2d (affine=False): per-channel stats over all Ho*Wo = 4*HW
        # positions = lane-axis reduce + sum of the 4 parity row blocks.
        row_sum = jnp.sum(acc, axis=1, keepdims=True)                    # (4*Cout, 1)
        mean = (row_sum[0:Cout] + row_sum[Cout:2 * Cout]
                + row_sum[2 * Cout:3 * Cout] + row_sum[3 * Cout:4 * Cout]) * inv_n
        mean4 = jnp.concatenate([mean, mean, mean, mean], axis=0)        # (4*Cout, 1)
        cen = acc - mean4
        sq_sum = jnp.sum(cen * cen, axis=1, keepdims=True)
        var = (sq_sum[0:Cout] + sq_sum[Cout:2 * Cout]
               + sq_sum[2 * Cout:3 * Cout] + sq_sum[3 * Cout:4 * Cout]) * inv_n
        rstd = jax.lax.rsqrt(var + EPS)                                  # EUP
        rstd4 = jnp.concatenate([rstd, rstd, rstd, rstd], axis=0)

        # ReLU + single cast + single lane-dense store for this sample.
        o_ref[bt] = jnp.maximum(cen * rstd4, 0.0).astype(o_ref.dtype)


def deconv_block(x_nchw, w_deconv, bias=None, *, max_block_batch=4):
    """x_nchw: (B, Cin, H, W); w_deconv: (Cin, Cout, K, K) (PyTorch ConvTranspose2d
    layout); bias: (Cout,) (unused: exactly cancelled by InstanceNorm mean
    subtraction). Returns (B, Cout, 2H, 2W) in NCHW."""
    del bias  # ConvTranspose2d bias is a per-channel constant -> cancelled by InstanceNorm2d.
    B, Cin, H, W = x_nchw.shape
    Cout = w_deconv.shape[1]
    Ho = (H - 1) * STRIDE - 2 * PADDING + K + OUTPUT_PADDING       # = 2H
    Wo = (W - 1) * STRIDE - 2 * PADDING + K + OUTPUT_PADDING       # = 2W
    HW = H * W

    # Shift-stacked input, built once in the wrapper (fused XLA pad/slice/concat/cast):
    # row block s holds x[m+sy, n+sx] for shift s in [(0,0),(0,1),(1,0),(1,1)],
    # zero where the shifted index leaves the input (one zero row + column of padding).
    xp = jnp.pad(x_nchw, ((0, 0), (0, 0), (0, 1), (0, 1)))
    shifts = [(0, 0), (0, 1), (1, 0), (1, 1)]
    x_stk = jnp.concatenate(
        [xp[:, :, sy:sy + H, sx:sx + W] for (sy, sx) in shifts], axis=1)
    x_stk = x_stk.reshape(B, 4 * Cin, HW).astype(COMPUTE_DTYPE)

    # Fused polyphase weights (4*Cout, 4*Cin): column block s <-> input shift s,
    # row block p <-> output parity p = 2*py + px. For parity (py,px) and shift
    # (sy,sx) the contributing deconv tap is (ky,kx) = (py+P-S*sy, px+P-S*sx)
    # if in range, else zero.
    wt = jnp.transpose(w_deconv, (2, 3, 1, 0))                     # (K, K, Cout, Cin)
    zero = jnp.zeros((Cout, Cin), w_deconv.dtype)
    parities = [(0, 0), (0, 1), (1, 0), (1, 1)]
    col_blocks = []
    for (sy, sx) in shifts:
        rows = []
        for (py, px) in parities:
            ky = py + PADDING - STRIDE * sy
            kx = px + PADDING - STRIDE * sx
            rows.append(wt[ky, kx] if (0 <= ky < K and 0 <= kx < K) else zero)
        col_blocks.append(jnp.concatenate(rows, axis=0))           # (4*Cout, Cin)
    w_cat = jnp.concatenate(col_blocks, axis=1).astype(COMPUTE_DTYPE)  # (4*Cout, 4*Cin)

    Bt = _pick_block_batch(B, max_block_batch)
    grid = (B // Bt,)

    kernel = functools.partial(_deconv_block_kernel, Cout=Cout, Bt=Bt)
    cd = jnp.dtype(COMPUTE_DTYPE).itemsize
    cost = pl.CostEstimate(
        flops=2 * B * (4 * Cout) * (4 * Cin) * HW,
        transcendentals=B * Cout,
        bytes_accessed=(B * 4 * Cin * HW * cd + 4 * Cout * 4 * Cin * cd
                        + B * 4 * Cout * HW * cd),
    )

    out_ph = pl.pallas_call(
        kernel,
        out_shape=jax.ShapeDtypeStruct((B, 4 * Cout, HW), COMPUTE_DTYPE),
        grid_spec=pltpu.PrefetchScalarGridSpec(
            num_scalar_prefetch=0,
            grid=grid,
            in_specs=[
                pl.BlockSpec((Bt, 4 * Cin, HW), lambda g: (g, 0, 0)),
                pl.BlockSpec((4 * Cout, 4 * Cin), lambda g: (0, 0)),
            ],
            out_specs=pl.BlockSpec((Bt, 4 * Cout, HW), lambda g: (g, 0, 0)),
        ),
        compiler_params=pltpu.CompilerParams(dimension_semantics=("parallel",)),
        cost_estimate=cost,
    )(x_stk, w_cat)

    # Parity interleave back to NCHW (tiny XLA reshape/transpose pass):
    # out[b, c, 2m+py, 2n+px] = out_ph[b, (2*py+px)*Cout + c, m*W+n].
    y = out_ph.reshape(B, 2, 2, Cout, H, W)
    y = jnp.transpose(y, (0, 3, 4, 1, 5, 2))                       # (B, Cout, H, 2, W, 2)
    return y.reshape(B, Cout, Ho, Wo).astype(x_nchw.dtype)


def deconv_block_reference(x_nchw, w_deconv, bias):
    """Pure-JAX reference (ConvTranspose2d + InstanceNorm2d + ReLU), NCHW in/out."""
    x = jnp.transpose(x_nchw, (0, 2, 3, 1))
    w_conv = jnp.transpose(w_deconv, (2, 3, 0, 1))[::-1, ::-1, :, :]
    pb = K - 1 - PADDING
    pa = K - 1 - PADDING + OUTPUT_PADDING
    y = jax.lax.conv_general_dilated(
        x, w_conv, window_strides=(1, 1),
        padding=((pb, pa), (pb, pa)),
        lhs_dilation=(STRIDE, STRIDE),
        dimension_numbers=('NHWC', 'HWIO', 'NHWC'))
    y = y + bias
    mean = y.mean(axis=(1, 2), keepdims=True)
    var = ((y - mean) ** 2).mean(axis=(1, 2), keepdims=True)
    y = (y - mean) * jax.lax.rsqrt(var + EPS)
    y = jnp.maximum(y, 0.0)
    return jnp.transpose(y, (0, 3, 1, 2))


if __name__ == "__main__":
    key = jax.random.PRNGKey(0)
    kx, kw, kb = jax.random.split(key, 3)

    B, Cin, Cout, H, W = 2, 4, 8, 16, 16
    x = jax.random.normal(kx, (B, Cin, H, W), dtype=jnp.float32)
    # ConvTranspose2d weight layout: (in_channels, out_channels, kH, kW)
    w_deconv = 0.1 * jax.random.normal(kw, (Cin, Cout, K, K), dtype=jnp.float32)
    bias = 0.1 * jax.random.normal(kb, (Cout,), dtype=jnp.float32)

    out = jax.block_until_ready(jax.jit(deconv_block)(x, w_deconv, bias))
    ref = jax.block_until_ready(deconv_block_reference(x, w_deconv, bias))

    assert out.shape == (B, Cout, 2 * H, 2 * W), out.shape
    np.testing.assert_allclose(np.asarray(out), np.asarray(ref), atol=5e-2, rtol=5e-2)
    print("KERNEL_OK")
</pallas_src>

<mosaic_0001>
module attributes {stable_mosaic.version = 11 : i64} {
  func.func @_deconv_block_kernel(%arg0: i32, %arg1: memref<1x16x256xbf16, #tpu.memory_space<vmem>>, %arg2: memref<32x16xbf16, #tpu.memory_space<vmem>>, %arg3: memref<1x32x256xbf16, #tpu.memory_space<vmem>>) attributes {dimension_semantics = [#tpu.dimension_semantics<parallel>], iteration_bounds = array<i64: 2>, scalar_prefetch = 0 : i64, scratch_operands = 0 : i64, tpu.core_type = #tpu.core_type<tc>, window_params = [{transform_indices = @transform_0, window_bounds = array<i64: 1, 16, 256>}, {pipeline_mode = #tpu.pipeline_mode<synchronous>, transform_indices = @transform_1, window_bounds = array<i64: 32, 16>}, {transform_indices = @transform_2, window_bounds = array<i64: 1, 32, 256>}]} {
    %c0 = arith.constant 0 : index
    %c0_0 = arith.constant 0 : index
    %0 = vector.load %arg2[%c0, %c0_0] : memref<32x16xbf16, #tpu.memory_space<vmem>>, vector<32x16xbf16>
    %c0_1 = arith.constant 0 : index
    %c0_2 = arith.constant 0 : index
    %c0_3 = arith.constant 0 : index
    %1 = vector.load %arg1[%c0_1, %c0_2, %c0_3] : memref<1x16x256xbf16, #tpu.memory_space<vmem>>, vector<1x16x256xbf16>
    %2 = vector.shape_cast %1 : vector<1x16x256xbf16> to vector<16x256xbf16>
    %cst = arith.constant dense<0.000000e+00> : vector<32x256xf32>
    %3 = tpu.matmul %0, %2, %cst {dimension_numbers = #tpu.dot_dimension_numbers<[1], [0], [0], [1], [0, 0, 1, 1], [], []>} : vector<32x16xbf16>, vector<16x256xbf16>, vector<32x256xf32> -> vector<32x256xf32>
    %cst_4 = arith.constant dense<0.000000e+00> : vector<32xf32>
    %4 = vector.multi_reduction <add>, %3, %cst_4 [1] : vector<32x256xf32> to vector<32xf32>
    %5 = vector.shape_cast %4 : vector<32xf32> to vector<32x1xf32>
    %6 = vector.extract_strided_slice %5 {offsets = [0, 0], sizes = [8, 1], strides = [1, 1]} : vector<32x1xf32> to vector<8x1xf32>
    %7 = vector.extract_strided_slice %5 {offsets = [8, 0], sizes = [8, 1], strides = [1, 1]} : vector<32x1xf32> to vector<8x1xf32>
    %8 = arith.addf %6, %7 : vector<8x1xf32>
    %9 = vector.extract_strided_slice %5 {offsets = [16, 0], sizes = [8, 1], strides = [1, 1]} : vector<32x1xf32> to vector<8x1xf32>
    %10 = arith.addf %8, %9 : vector<8x1xf32>
    %11 = vector.extract_strided_slice %5 {offsets = [24, 0], sizes = [8, 1], strides = [1, 1]} : vector<32x1xf32> to vector<8x1xf32>
    %12 = arith.addf %10, %11 : vector<8x1xf32>
    %cst_5 = arith.constant 9.765625E-4 : f32
    %13 = vector.broadcast %cst_5 : f32 to vector<8x1xf32>
    %14 = arith.mulf %12, %13 : vector<8x1xf32>
    %15 = tpu.concatenate %14, %14, %14, %14 in 0 : vector<8x1xf32>, vector<8x1xf32>, vector<8x1xf32>, vector<8x1xf32> -> vector<32x1xf32>
    %16 = vector.broadcast %15 : vector<32x1xf32> to vector<32x256xf32>
    %17 = arith.subf %3, %16 : vector<32x256xf32>
    %18 = arith.mulf %17, %17 : vector<32x256xf32>
    %cst_6 = arith.constant dense<0.000000e+00> : vector<32xf32>
    %19 = vector.multi_reduction <add>, %18, %cst_6 [1] : vector<32x256xf32> to vector<32xf32>
    %20 = vector.shape_cast %19 : vector<32xf32> to vector<32x1xf32>
    %21 = vector.extract_strided_slice %20 {offsets = [0, 0], sizes = [8, 1], strides = [1, 1]} : vector<32x1xf32> to vector<8x1xf32>
    %22 = vector.extract_strided_slice %20 {offsets = [8, 0], sizes = [8, 1], strides = [1, 1]} : vector<32x1xf32> to vector<8x1xf32>
    %23 = arith.addf %21, %22 : vector<8x1xf32>
    %24 = vector.extract_strided_slice %20 {offsets = [16, 0], sizes = [8, 1], strides = [1, 1]} : vector<32x1xf32> to vector<8x1xf32>
    %25 = arith.addf %23, %24 : vector<8x1xf32>
    %26 = vector.extract_strided_slice %20 {offsets = [24, 0], sizes = [8, 1], strides = [1, 1]} : vector<32x1xf32> to vector<8x1xf32>
    %27 = arith.addf %25, %26 : vector<8x1xf32>
    %cst_7 = arith.constant 9.765625E-4 : f32
    %28 = vector.broadcast %cst_7 : f32 to vector<8x1xf32>
    %29 = arith.mulf %27, %28 : vector<8x1xf32>
    %cst_8 = arith.constant 9.99999974E-6 : f32
    %30 = vector.broadcast %cst_8 : f32 to vector<8x1xf32>
    %31 = arith.addf %29, %30 : vector<8x1xf32>
    %32 = math.rsqrt %31 : vector<8x1xf32>
    %33 = tpu.concatenate %32, %32, %32, %32 in 0 : vector<8x1xf32>, vector<8x1xf32>, vector<8x1xf32>, vector<8x1xf32> -> vector<32x1xf32>
    %34 = vector.broadcast %33 : vector<32x1xf32> to vector<32x256xf32>
    %35 = arith.mulf %17, %34 : vector<32x256xf32>
    %cst_9 = arith.constant 0.000000e+00 : f32
    %36 = vector.broadcast %cst_9 : f32 to vector<32x256xf32>
    %37 = arith.maximumf %35, %36 : vector<32x256xf32>
    %38 = arith.truncf %37 : vector<32x256xf32> to vector<32x256xbf16>
    %c0_10 = arith.constant 0 : index
    %c0_11 = arith.constant 0 : index
    %c0_12 = arith.constant 0 : index
    %39 = vector.load %arg3[%c0_10, %c0_11, %c0_12] : memref<1x32x256xbf16, #tpu.memory_space<vmem>>, vector<1x32x256xbf16>
    %40 = vector.shape_cast %39 : vector<1x32x256xbf16> to vector<32x256xbf16>
    %41 = vector.shape_cast %38 : vector<32x256xbf16> to vector<1x32x256xbf16>
    tpu.vector_store %arg3[%c0_10, %c0_11, %c0_12], %41 {strides = array<i32>} : memref<1x32x256xbf16, #tpu.memory_space<vmem>>, vector<1x32x256xbf16>,
    return
  }
  func.func @transform_0(%arg0: i32) -> (i32, i32, i32) {
    %c0_i32 = arith.constant 0 : i32
    %c0_i32_0 = arith.constant 0 : i32
    %c0_i32_1 = arith.constant 0 : i32
    return %arg0, %c0_i32, %c0_i32_0 : i32, i32, i32
  }
  func.func @transform_1(%arg0: i32) -> (i32, i32) {
    %c0_i32 = arith.constant 0 : i32
    %c0_i32_0 = arith.constant 0 : i32
    %c0_i32_1 = arith.constant 0 : i32
    return %c0_i32, %c0_i32_0 : i32, i32
  }
  func.func @transform_2(%arg0: i32) -> (i32, i32, i32) {
    %c0_i32 = arith.constant 0 : i32
    %c0_i32_0 = arith.constant 0 : i32
    %c0_i32_1 = arith.constant 0 : i32
    return %arg0, %c0_i32, %c0_i32_0 : i32, i32, i32
  }
}

</mosaic_0001>

<bundles_post_ra>
// kernel: deconv_block.1
= control target key start
LH: loop header
LB: loop body
LE: loop exit
PB: predicated region body
PF: predicated region fallthrough
CT: control target
= control target key end

     0   :  { %s441_s9 = smov 0   ;;  %s468_s0 = inlined_call_operand.vmem [shape: bf16[2,16,256], index: 0, kind: input, shape index: {}]   ;;  %s469_s1 = inlined_call_operand.vmem [shape: bf16[32,16], index: 1, kind: input, shape index: {}]   ;;  %s470_s2 = inlined_call_operand.vmem [shape: bf16[2,32,256], index: 2, kind: output, shape index: {}]  }
   0x1 LB: > { %s364_s10 = sadd.s32 4294967295, %s423_s9   ;;  %p368_p0 = scmp.ge.s32.totalorder %s423_s9, 1  ;;  %s423_s9 = sphi %s441_s9, %s12_s9  }
   0x2   : > { %p112_p1 = scmp.lt.s32.totalorder %s423_s9, 3 }
   0x4   : > { %p113_p2 = pnand %p368_p0, %p112_p1 }
   0x5   : > { %p134_p3 = scmp.lt.s32.totalorder (!%p113_p2), %s364_s10, 1 }
   0x6   : > { %116 = sbr.rel (%p113_p2) target bundleno = 653 (0x28d), region = 28 }
   0xb   : > { %s472_s10 = smov (!%p134_p3, %s364_s10), 1  ;;  %v397_v6 = vld [vmem:[%s469_s1] sm:$0xff]  ;;  %v398_v7 = vld [vmem:[%s469_s1 + $0x8] sm:$0xff]  ;;  %vm171_vm0 = vcmask 130048   ;;  %v425_v20 = vmov 0  }
   0xc   : > { %s395_s11 = sshll.u32 %s472_s10, 4  ;;  %412 = vset.pattern.permute.xlu2 %v425_v20  ;;  %413 = vset.pattern.permute.xlu1 %v425_v20  ;;  %s396_s19 = sshll.u32 %s472_s10, 5 }
   0xd   : > { %s138_s14 = scalar_lea.vmem %s468_s0, %s395_s11  ;;  %414 = vset.pattern.permute.xlu0 %v425_v20  ;;  %s143_s22 = scalar_lea.vmem %s470_s2, %s396_s19 }
   0xe   : > { %v383_v0 = vld [vmem:[%s138_s14] sm:$0xf]  ;;  %v400_v1 = vld [vmem:[%s138_s14 + $0x4] sm:$0xf0]  ;;  %v399_v2 = vld [vmem:[%s138_s14 + $0x4] sm:$0xf] }
   0xf   : > { %v384_v3 = vor.u32 %v400_v1, %v383_v0  ;;  %v385_v4 = vld [vmem:[%s138_s14 + $0x8] sm:$0xf0] }
  0x10   : > { %v388_v5 = vor.u32 %v399_v2, %v385_v4 }
  0x11   : > { %185 = vmatpush.bf16.msra.mxu0 %v384_v3  ;;  %401 = vmatpush.bf16.msra.mxu2 %v384_v3 }
  0x12   : > { %204 = vmatpush.bf16.msra.mxu1 %v388_v5  ;;  %402 = vmatpush.bf16.msra.mxu3 %v388_v5 }
  0x14   : > { %389 = vmatmul.msk.bf16.vlgmr.msra.gmra.mxu0 %vm171_vm0, %v397_v6  ;;  %390 = vmatmul.msk.bf16.vlgmr.msra.gmra.mxu2 %vm171_vm0, %v398_v7 }
  0x15   : > { %391 = vmatmul.msk.bf16.vlgmr.msra.gmra.mxu1 %vm171_vm0, %v397_v6  ;;  %392 = vmatmul.msk.bf16.vlgmr.msra.gmra.mxu3 %vm171_vm0, %v398_v7 }
  0x91   : > { %v187_v8 = vpop.f32.mrf.mxu0 }
  0x92   : > { %v206_v9 = vpop.f32.mrf.mxu1 }
  0x93   : > { %v216_v10 = vadd.f32 %v206_v9, %v187_v8 }
  0x95   : > { %217 = vadd.xlane.f32.xlu0 %v216_v10 }
  0x97   : > { %v192_v11 = vpop.f32.mrf.mxu2 }
  0x98   : > { %v211_v12 = vpop.f32.mrf.mxu3 }
  0x99   : > { %v189_v13 = vpop.f32.mrf.mxu0  ;;  %v222_v14 = vadd.f32 %v211_v12, %v192_v11 }
  0x9a   : > { %v208_v15 = vpop.f32.mrf.mxu1 }
  0x9b   : > { %v219_v16 = vadd.f32 %v208_v15, %v189_v13  ;;  %223 = vadd.xlane.f32.xlu1 %v222_v14 }
  0x9d   : > { %220 = vadd.xlane.f32.xlu0 %v219_v16 }
  0x9f   : > { %v194_v17 = vpop.f32.mrf.mxu2 }
  0xa0   : > { %v213_v18 = vpop.f32.mrf.mxu3 }
  0xa1   : > { %v225_v19 = vadd.f32 %v213_v18, %v194_v17 }
  0xa3   : > { %226 = vadd.xlane.f32.xlu1 %v225_v19 }
 0x108   : > { %v218_v21 = vpop.xlane.xlu0 %217 }
 0x10e   : > { %v224_v22 = vpop.xlane.xlu1 %223 }
 0x110   : > { %v221_v23 = vpop.xlane.xlu0 %220 }
 0x111   : > { %v228_v24 = vadd.f32 %v221_v23, %v218_v21 }
 0x113   : > { %v229_v25 = vadd.f32 %v228_v24, %v224_v22 }
 0x116   : > { %v227_v26 = vpop.xlane.xlu1 %226 }
 0x117   : > { %v230_v27 = vadd.f32 %v229_v25, %v227_v26 }
 0x119   : > { %v231_v28 = vmul.f32 0.0009765625, %v230_v27 }
 0x11b   : > { %234 = vperm.xlu2 %412, %v231_v28  }
 0x175   : > { %v235_v29 = vpop.permute.xlu2 %234 }
 0x176   : > { %v241_v30 = vsub.f32 %v192_v11, %v235_v29  ;;  %v242_v31 = vsub.f32 %v211_v12, %v235_v29  ;;  %v239_v32 = vsub.f32 %v189_v13, %v235_v29  ;;  %v240_v33 = vsub.f32 %v208_v15, %v235_v29 }
 0x177   : > { %v237_v34 = vsub.f32 %v187_v8, %v235_v29  ;;  %v238_v35 = vsub.f32 %v206_v9, %v235_v29  ;;  %v243_v44 = vsub.f32 %v194_v17, %v235_v29  ;;  %v244_v45 = vsub.f32 %v213_v18, %v235_v29 }
 0x178   : > { %v249_v36 = vmul.f32 %v241_v30, %v241_v30  ;;  %v250_v37 = vmul.f32 %v242_v31, %v242_v31  ;;  %v247_v38 = vmul.f32 %v239_v32, %v239_v32  ;;  %v248_v39 = vmul.f32 %v240_v33, %v240_v33 }
 0x179   : > { %v245_v40 = vmul.f32 %v237_v34, %v237_v34  ;;  %v246_v41 = vmul.f32 %v238_v35, %v238_v35  ;;  %v251_v47 = vmul.f32 %v243_v44, %v243_v44  ;;  %v252_v48 = vmul.f32 %v244_v45, %v244_v45 }
 0x17a   : > { %v259_v42 = vadd.f32 %v250_v37, %v249_v36  ;;  %v256_v43 = vadd.f32 %v248_v39, %v247_v38 }
 0x17b   : > { %v253_v46 = vadd.f32 %v246_v41, %v245_v40  ;;  %v262_v49 = vadd.f32 %v252_v48, %v251_v47 }
 0x17c   : > { %260 = vadd.xlane.f32.xlu1 %v259_v42  ;;  %257 = vadd.xlane.f32.xlu0 %v256_v43 }
 0x17d   : > { %254 = vadd.xlane.f32.xlu2 %v253_v46 }
 0x184   : > { %263 = vadd.xlane.f32.xlu0 %v262_v49 }
 0x1ef   : > { %v258_v50 = vpop.xlane.xlu0 %257  ;;  %v261_v53 = vpop.xlane.xlu1 %260 }
 0x1f0   : > { %v255_v51 = vpop.xlane.xlu2 %254 }
 0x1f1   : > { %v265_v52 = vadd.f32 %v258_v50, %v255_v51 }
 0x1f3   : > { %v266_v54 = vadd.f32 %v265_v52, %v261_v53 }
 0x1f7   : > { %v264_v55 = vpop.xlane.xlu0 %263 }
 0x1f8   : > { %v267_v56 = vadd.f32 %v266_v54, %v264_v55 }
 0x1fa   : > { %v268_v57 = vmul.f32 0.0009765625, %v267_v56 }
 0x1fc   : > { %v269_v58 = vadd.f32 1e-05, %v268_v57 }
 0x1fe   : > { %415 = vrsqrt.f32 %v269_v58  ;;  %vm276_vm2 = vweird.f32 %v269_v58 }
 0x204   : > { %v416_v59 = vpop.eup %415 }
 0x205   : > { %v271_v60 = vmul.f32 %v416_v59, %v269_v58  ;;  %vm277_vm1 = vweird.f32 %v416_v59 }
 0x206   : > { %vm278_vm3 = vmor %vm276_vm2, %vm277_vm1 }
 0x207   : > { %v272_v61 = vmul.f32 %v416_v59, %v271_v60 }
 0x209   : > { %v273_v62 = vmul.f32 0.5, %v272_v61 }
 0x20b   : > { %v274_v63 = vsub.f32 1.5, %v273_v62 }
 0x20d   : > { %v275_v0 = vmul.f32 %v416_v59, %v274_v63 }
 0x20f   : > { %v279_v1 = vsel %vm278_vm3, %v416_v59, %v275_v0 }
 0x210   : > { %282 = vperm.xlu1 %413, %v279_v1  }
 0x282   : > { %v283_v2 = vpop.permute.xlu1 %282 }
 0x283   : > { %v285_v3 = vmul.f32 %v283_v2, %v237_v34  ;;  %v286_v4 = vmul.f32 %v283_v2, %v238_v35  ;;  %v287_v5 = vmul.f32 %v283_v2, %v239_v32  ;;  %v288_v6 = vmul.f32 %v283_v2, %v240_v33 }
 0x284   : > { %v289_v7 = vmul.f32 %v283_v2, %v241_v30  ;;  %v290_v8 = vmul.f32 %v283_v2, %v242_v31  ;;  %v291_v9 = vmul.f32 %v283_v2, %v243_v44  ;;  %v292_v10 = vmul.f32 %v283_v2, %v244_v45 }
 0x285   : > { %v293_v11 = vmax.f32 %v285_v3, 0.0  ;;  %v294_v12 = vmax.f32 %v286_v4, 0.0  ;;  %v295_v13 = vmax.f32 %v287_v5, 0.0  ;;  %v296_v14 = vmax.f32 %v288_v6, 0.0 }
 0x286   : > { %v297_v15 = vmax.f32 %v289_v7, 0.0  ;;  %v298_v16 = vmax.f32 %v290_v8, 0.0  ;;  %v299_v17 = vmax.f32 %v291_v9, 0.0  ;;  %v300_v18 = vmax.f32 %v292_v10, 0.0 }
 0x287   : > { %v301_v19 = vpack.c.bf16 %v294_v12, %v293_v11  ;;  %v302_v20 = vpack.c.bf16 %v296_v14, %v295_v13 }
 0x288   : > { %v303_v21 = vpack.c.bf16 %v298_v16, %v297_v15  ;;  %v304_v22 = vpack.c.bf16 %v300_v18, %v299_v17 }
 0x289   : > { %305 = vst [vmem:[%s143_s22] sm:$0xff] %v301_v19 }
 0x28a   : > { %306 = vst [vmem:[%s143_s22 + $0x8] sm:$0xff] %v302_v20 }
 0x28b   : > { %307 = vst [vmem:[%s143_s22 + $0x10] sm:$0xff] %v303_v21 }
 0x28c   : > { %308 = vst [vmem:[%s143_s22 + $0x18] sm:$0xff] %v304_v22 }
 0x28d PF: > { %s12_s9 = sadd.s32 1, %s423_s9  }
 0x28e   : > { %p9_p4 = scmp.ge.s32.totalorder %s12_s9, 4  }
 0x290   :  { %11 = sbr.rel (!%p9_p4) target bundleno = 1 (0x1), region = 58 }

</bundles_post_ra>
